<compile_context>
chip_gen: v6e
topology: v6e:2x2x1
jax: 0.10.0
libtpu: 0.0.40
codegen_flags: <defaults>
</compile_context>

<pallas_src>
import functools

import jax
import jax.numpy as jnp
import numpy as np
from jax.experimental import pallas as pl
from jax.experimental.pallas import tpu as pltpu

_SUBLANE = 16  # batch-tile alignment; safe for both f32 (8) and bf16 (16) tiling


def _round_up(n, m):
    return ((n + m - 1) // m) * m


def _detect_num_cores():
    """Best-effort TensorCore-per-device count (2 on v7x), safe fallback 1."""
    try:
        info = pltpu.get_tpu_info()
        for attr in ("num_cores", "num_tensorcores", "tensorcore_count"):
            v = getattr(info, attr, None)
            if isinstance(v, int) and v > 0:
                return min(v, 2)
    except Exception:
        pass
    try:
        dev = jax.devices()[0]
        for attr in ("num_cores", "core_count"):
            v = getattr(dev, attr, None)
            if isinstance(v, int) and v > 0:
                return min(v, 2)
    except Exception:
        pass
    return 1


def _choose_tile(bsz, tile_b, num_cores):
    """Pick (tile, grid): as few grid steps as possible, even grid on 2-TC chips."""
    tile_b = max(_SUBLANE, (tile_b // _SUBLANE) * _SUBLANE)
    steps = pl.cdiv(bsz, tile_b)
    if num_cores > 1 and bsz > _SUBLANE * num_cores:
        steps = _round_up(steps, num_cores)          # even grid -> both TCs busy
    tile = _round_up(pl.cdiv(bsz, steps), _SUBLANE)  # don't over-pad odd batches
    grid = pl.cdiv(bsz, tile)
    return tile, grid


def _fused_double_q_kernel(x_ref, w1_ref, w2_ref, w3_ref, b_ref, o_ref):
    """One batch tile: fused (qf1 ++ qf2) MLP, TD3 min, narrow [tile,d_out] store."""
    cdt = w1_ref.dtype                     # MXU input dtype (f32 or bf16)
    hh = w1_ref.shape[1]                   # fused hidden width (2H)
    op = w3_ref.shape[1]                   # padded fused output width
    d_out = o_ref.shape[1]

    b = b_ref[...]                         # (3, P) f32 bias block
    b1 = b[0:1, :hh]
    b2 = b[1:2, :hh]
    b3 = b[2:3, :op]

    x = x_ref[...].astype(cdt)             # in-kernel cast (no wrapper XLA pass)

    h = jnp.dot(x, w1_ref[...], preferred_element_type=jnp.float32)
    h = jnp.maximum(h + b1, 0.0).astype(cdt)

    h = jnp.dot(h, w2_ref[...], preferred_element_type=jnp.float32)
    h = jnp.maximum(h + b2, 0.0).astype(cdt)

    y = jnp.dot(h, w3_ref[...], preferred_element_type=jnp.float32) + b3

    # TD3 minimum of the two fused heads, fused into the kernel.
    o_ref[...] = jnp.minimum(y[:, :d_out], y[:, d_out:2 * d_out]).astype(o_ref.dtype)


def pack_double_q_params(params1, params2, weight_dtype=jnp.float32):
    """One-time fusion of qf1/qf2 params into one 128-lane-aligned MLP.

    Each params tuple is (w1 [d_in,H], b1 [1,H], w2 [H,H], b2 [1,H],
    w3 [H,d_out], b3 [1,d_out]) with weights stored as [in, out].
    Returns ((W1, W2, W3, Bias), d_out). Biases stay f32 (added to f32 acc).
    NOTE: on v5e pass weight_dtype=f32 (no bf16 VPU there).
    """
    p1 = [jnp.asarray(p, jnp.float32) for p in params1]
    p2 = [jnp.asarray(p, jnp.float32) for p in params2]
    w11, b11, w12, b12, w13, b13 = p1
    w21, b21, w22, b22, w23, b23 = p2
    _, H = w11.shape
    d_out = w13.shape[1]
    hh = 2 * H
    assert hh % 128 == 0, "fused hidden (2*H) must be a multiple of 128"
    out_pad = _round_up(max(2 * d_out, 128), 128)

    W1 = jnp.concatenate([w11, w21], axis=1).astype(weight_dtype)        # [d_in, 2H]

    W2 = jnp.zeros((hh, hh), jnp.float32)                                # block-diag
    W2 = W2.at[:H, :H].set(w12).at[H:, H:].set(w22).astype(weight_dtype)

    W3 = jnp.zeros((hh, out_pad), jnp.float32)                           # lane-padded
    W3 = W3.at[:H, :d_out].set(w13).at[H:, d_out:2 * d_out].set(w23)
    W3 = W3.astype(weight_dtype)

    # Single (3, P) f32 bias block: row0=b1, row1=b2, row2=b3 (lane-dense).
    P = max(hh, out_pad)
    Bias = jnp.zeros((3, P), jnp.float32)
    Bias = Bias.at[0, :hh].set(jnp.concatenate([b11, b21], axis=1)[0])
    Bias = Bias.at[1, :hh].set(jnp.concatenate([b12, b22], axis=1)[0])
    Bias = Bias.at[2, :d_out].set(b13[0]).at[2, d_out:2 * d_out].set(b23[0])

    return (W1, W2, W3, Bias), d_out


@functools.partial(jax.jit, static_argnames=("d_out", "tile_b", "num_cores"))
def double_q_forward(x, packed_params, *, d_out, tile_b=2048, num_cores=1):
    """y = minimum(qf1(x), qf2(x)) — one pallas_call, no pre/post XLA ops."""
    W1, W2, W3, Bias = packed_params
    bsz, d_in = x.shape
    assert W1.shape[0] == d_in

    tile, grid = _choose_tile(bsz, tile_b, num_cores)

    x_spec = pl.BlockSpec((tile, d_in), lambda i: (i, 0))
    o_spec = pl.BlockSpec((tile, d_out), lambda i: (i, 0))

    def full_spec(a):
        # Whole (replicated) parameter block, constant index across the grid.
        return pl.BlockSpec(a.shape, lambda i: (0,) * a.ndim)

    return pl.pallas_call(
        _fused_double_q_kernel,
        out_shape=jax.ShapeDtypeStruct((bsz, d_out), jnp.float32),
        grid=(grid,),
        in_specs=[x_spec, full_spec(W1), full_spec(W2), full_spec(W3),
                  full_spec(Bias)],
        out_specs=o_spec,
        compiler_params=pltpu.CompilerParams(
            dimension_semantics=("parallel",)),
    )(x, W1, W2, W3, Bias)


def _init_mlp_params(key, d_in, hidden, d_out):
    """Deterministic param init; weights [in, out], biases [1, out]."""
    ks = jax.random.split(key, 6)

    def lin(kw, kb, fan_in, fan_out):
        bound = 1.0 / np.sqrt(fan_in)
        w = jax.random.uniform(kw, (fan_in, fan_out), jnp.float32, -bound, bound)
        b = jax.random.uniform(kb, (1, fan_out), jnp.float32, -bound, bound)
        return w, b

    w1, b1 = lin(ks[0], ks[1], d_in, hidden)
    w2, b2 = lin(ks[2], ks[3], hidden, hidden)
    w3, b3 = lin(ks[4], ks[5], hidden, d_out)
    return (w1, b1, w2, b2, w3, b3)


def _reference(x, params1, params2):
    def mlp(p):
        w1, b1, w2, b2, w3, b3 = p
        h1 = jnp.maximum(x @ w1 + b1, 0.0)
        h2 = jnp.maximum(h1 @ w2 + b2, 0.0)
        return h2 @ w3 + b3
    return jnp.minimum(mlp(params1), mlp(params2))


def _reference_low_precision(x, params1, params2, dtype):
    """Mimics the kernel's low-precision path: dtype weights/activations,
    f32 MXU accumulation, f32 biases, f32 output."""
    def mlp(p):
        w1, b1, w2, b2, w3, b3 = p
        h = x.astype(dtype)
        h = jnp.maximum(
            jnp.dot(h, w1.astype(dtype), preferred_element_type=jnp.float32) + b1,
            0.0).astype(dtype)
        h = jnp.maximum(
            jnp.dot(h, w2.astype(dtype), preferred_element_type=jnp.float32) + b2,
            0.0).astype(dtype)
        return jnp.dot(h, w3.astype(dtype), preferred_element_type=jnp.float32) + b3
    return jnp.minimum(mlp(params1), mlp(params2))


if __name__ == "__main__":
    key = jax.random.PRNGKey(0)
    k_x1, k_x2, k_p1, k_p2 = jax.random.split(key, 4)

    D_IN, HIDDEN, D_OUT = 32, 64, 16          # fused hidden = 128, lane-aligned
    params1 = _init_mlp_params(k_p1, D_IN, HIDDEN, D_OUT)
    params2 = _init_mlp_params(k_p2, D_IN, HIDDEN, D_OUT)

    packed_f32, d_out = pack_double_q_params(params1, params2)
    n_cores = _detect_num_cores()

    # --- f32, tiny batch not divisible by anything (masked partial block) ----
    B_small = 20
    x_small = jax.random.normal(k_x1, (B_small, D_IN), dtype=jnp.float32)
    y_small = jax.block_until_ready(
        double_q_forward(x_small, packed_f32, d_out=d_out, num_cores=n_cores))
    np.testing.assert_allclose(
        np.asarray(y_small), np.asarray(_reference(x_small, params1, params2)),
        rtol=5e-4, atol=5e-4)

    # --- f32, larger batch -> multi-step grid (even grid on 2-TC chips) ------
    B_big = 2600
    x_big = jax.random.normal(k_x2, (B_big, D_IN), dtype=jnp.float32)
    y_big = jax.block_until_ready(
        double_q_forward(x_big, packed_f32, d_out=d_out, tile_b=1024,
                         num_cores=n_cores))
    np.testing.assert_allclose(
        np.asarray(y_big), np.asarray(_reference(x_big, params1, params2)),
        rtol=5e-4, atol=5e-4)

    # --- bf16 weights/activations (v6e/v7x option; x stays f32, cast in-kernel)
    packed_bf16, _ = pack_double_q_params(params1, params2,
                                          weight_dtype=jnp.bfloat16)
    y_bf16 = jax.block_until_ready(
        double_q_forward(x_big, packed_bf16, d_out=d_out, num_cores=n_cores))
    y_bf16_ref = _reference_low_precision(x_big, params1, params2, jnp.bfloat16)
    np.testing.assert_allclose(
        np.asarray(y_bf16), np.asarray(y_bf16_ref), rtol=5e-2, atol=5e-2)

    print("KERNEL_OK")
</pallas_src>

<mosaic_0001>
module attributes {stable_mosaic.version = 11 : i64} {
  func.func @_fused_double_q_kernel(%arg0: i32, %arg1: memref<32x32xf32, #tpu.memory_space<vmem>>, %arg2: memref<32x128xf32, #tpu.memory_space<vmem>>, %arg3: memref<128x128xf32, #tpu.memory_space<vmem>>, %arg4: memref<128x128xf32, #tpu.memory_space<vmem>>, %arg5: memref<3x128xf32, #tpu.memory_space<vmem>>, %arg6: memref<32x16xf32, #tpu.memory_space<vmem>>) attributes {dimension_semantics = [#tpu.dimension_semantics<parallel>], iteration_bounds = array<i64: 1>, scalar_prefetch = 0 : i64, scratch_operands = 0 : i64, tpu.core_type = #tpu.core_type<tc>, window_params = [{transform_indices = @transform_0, window_bounds = array<i64: 32, 32>}, {pipeline_mode = #tpu.pipeline_mode<synchronous>, transform_indices = @transform_1, window_bounds = array<i64: 32, 128>}, {pipeline_mode = #tpu.pipeline_mode<synchronous>, transform_indices = @transform_2, window_bounds = array<i64: 128, 128>}, {pipeline_mode = #tpu.pipeline_mode<synchronous>, transform_indices = @transform_3, window_bounds = array<i64: 128, 128>}, {pipeline_mode = #tpu.pipeline_mode<synchronous>, transform_indices = @transform_4, window_bounds = array<i64: 3, 128>}, {transform_indices = @transform_5, window_bounds = array<i64: 32, 16>}]} {
    %c0 = arith.constant 0 : index
    %c0_0 = arith.constant 0 : index
    %0 = vector.load %arg5[%c0, %c0_0] : memref<3x128xf32, #tpu.memory_space<vmem>>, vector<3x128xf32>
    %1 = vector.extract_strided_slice %0 {offsets = [0, 0], sizes = [1, 128], strides = [1, 1]} : vector<3x128xf32> to vector<1x128xf32>
    %2 = vector.extract_strided_slice %0 {offsets = [1, 0], sizes = [1, 128], strides = [1, 1]} : vector<3x128xf32> to vector<1x128xf32>
    %3 = vector.extract_strided_slice %0 {offsets = [2, 0], sizes = [1, 128], strides = [1, 1]} : vector<3x128xf32> to vector<1x128xf32>
    %c0_1 = arith.constant 0 : index
    %c0_2 = arith.constant 0 : index
    %4 = vector.load %arg1[%c0_1, %c0_2] : memref<32x32xf32, #tpu.memory_space<vmem>>, vector<32x32xf32>
    %c0_3 = arith.constant 0 : index
    %c0_4 = arith.constant 0 : index
    %5 = vector.load %arg2[%c0_3, %c0_4] : memref<32x128xf32, #tpu.memory_space<vmem>>, vector<32x128xf32>
    %cst = arith.constant dense<0.000000e+00> : vector<32x128xf32>
    %6 = tpu.matmul %4, %5, %cst {dimension_numbers = #tpu.dot_dimension_numbers<[1], [0], [0], [1], [0, 0, 1, 1], [], []>} : vector<32x32xf32>, vector<32x128xf32>, vector<32x128xf32> -> vector<32x128xf32>
    %7 = vector.broadcast %1 : vector<1x128xf32> to vector<32x128xf32>
    %8 = arith.addf %6, %7 : vector<32x128xf32>
    %cst_5 = arith.constant 0.000000e+00 : f32
    %9 = vector.broadcast %cst_5 : f32 to vector<32x128xf32>
    %10 = arith.maximumf %8, %9 : vector<32x128xf32>
    %c0_6 = arith.constant 0 : index
    %c0_7 = arith.constant 0 : index
    %11 = vector.load %arg3[%c0_6, %c0_7] : memref<128x128xf32, #tpu.memory_space<vmem>>, vector<128x128xf32>
    %cst_8 = arith.constant dense<0.000000e+00> : vector<32x128xf32>
    %12 = tpu.matmul %10, %11, %cst_8 {dimension_numbers = #tpu.dot_dimension_numbers<[1], [0], [0], [1], [0, 0, 1, 1], [], []>} : vector<32x128xf32>, vector<128x128xf32>, vector<32x128xf32> -> vector<32x128xf32>
    %13 = vector.broadcast %2 : vector<1x128xf32> to vector<32x128xf32>
    %14 = arith.addf %12, %13 : vector<32x128xf32>
    %cst_9 = arith.constant 0.000000e+00 : f32
    %15 = vector.broadcast %cst_9 : f32 to vector<32x128xf32>
    %16 = arith.maximumf %14, %15 : vector<32x128xf32>
    %c0_10 = arith.constant 0 : index
    %c0_11 = arith.constant 0 : index
    %17 = vector.load %arg4[%c0_10, %c0_11] : memref<128x128xf32, #tpu.memory_space<vmem>>, vector<128x128xf32>
    %cst_12 = arith.constant dense<0.000000e+00> : vector<32x128xf32>
    %18 = tpu.matmul %16, %17, %cst_12 {dimension_numbers = #tpu.dot_dimension_numbers<[1], [0], [0], [1], [0, 0, 1, 1], [], []>} : vector<32x128xf32>, vector<128x128xf32>, vector<32x128xf32> -> vector<32x128xf32>
    %19 = vector.broadcast %3 : vector<1x128xf32> to vector<32x128xf32>
    %20 = arith.addf %18, %19 : vector<32x128xf32>
    %21 = vector.extract_strided_slice %20 {offsets = [0, 0], sizes = [32, 16], strides = [1, 1]} : vector<32x128xf32> to vector<32x16xf32>
    %22 = vector.extract_strided_slice %20 {offsets = [0, 16], sizes = [32, 16], strides = [1, 1]} : vector<32x128xf32> to vector<32x16xf32>
    %23 = arith.minimumf %21, %22 : vector<32x16xf32>
    %c0_13 = arith.constant 0 : index
    %c0_14 = arith.constant 0 : index
    %24 = vector.load %arg6[%c0_13, %c0_14] : memref<32x16xf32, #tpu.memory_space<vmem>>, vector<32x16xf32>
    tpu.vector_store %arg6[%c0_13, %c0_14], %23 {strides = array<i32>} : memref<32x16xf32, #tpu.memory_space<vmem>>, vector<32x16xf32>,
    return
  }
  func.func @transform_0(%arg0: i32) -> (i32, i32) {
    %c0_i32 = arith.constant 0 : i32
    %c0_i32_0 = arith.constant 0 : i32
    return %arg0, %c0_i32 : i32, i32
  }
  func.func @transform_1(%arg0: i32) -> (i32, i32) {
    %c0_i32 = arith.constant 0 : i32
    %c0_i32_0 = arith.constant 0 : i32
    %c0_i32_1 = arith.constant 0 : i32
    return %c0_i32, %c0_i32_0 : i32, i32
  }
  func.func @transform_2(%arg0: i32) -> (i32, i32) {
    %c0_i32 = arith.constant 0 : i32
    %c0_i32_0 = arith.constant 0 : i32
    %c0_i32_1 = arith.constant 0 : i32
    return %c0_i32, %c0_i32_0 : i32, i32
  }
  func.func @transform_3(%arg0: i32) -> (i32, i32) {
    %c0_i32 = arith.constant 0 : i32
    %c0_i32_0 = arith.constant 0 : i32
    %c0_i32_1 = arith.constant 0 : i32
    return %c0_i32, %c0_i32_0 : i32, i32
  }
  func.func @transform_4(%arg0: i32) -> (i32, i32) {
    %c0_i32 = arith.constant 0 : i32
    %c0_i32_0 = arith.constant 0 : i32
    %c0_i32_1 = arith.constant 0 : i32
    return %c0_i32, %c0_i32_0 : i32, i32
  }
  func.func @transform_5(%arg0: i32) -> (i32, i32) {
    %c0_i32 = arith.constant 0 : i32
    %c0_i32_0 = arith.constant 0 : i32
    return %arg0, %c0_i32 : i32, i32
  }
}

</mosaic_0001>

<bundles_post_ra>
// kernel: double_q_forward.1
= control target key start
LH: loop header
LB: loop body
LE: loop exit
PB: predicated region body
PF: predicated region fallthrough
CT: control target
= control target key end

     0   :  { %10 = vsyncpa [#allocation3], 0  ;;  %s793_s0 = inlined_call_operand.hbm [shape: f32[20,32], index: 0, kind: input, shape index: {}]   ;;  %s794_s1 = inlined_call_operand.hbm [shape: f32[32,128], index: 1, kind: input, shape index: {}]   ;;  %s795_s2 = inlined_call_operand.hbm [shape: f32[128,128], index: 2, kind: input, shape index: {}]   ;;  %s796_s3 = inlined_call_operand.hbm [shape: f32[128,128], index: 3, kind: input, shape index: {}]   ;;  %s797_s4 = inlined_call_operand.vmem [shape: f32[3,128], index: 4, kind: input, shape index: {}]   ;;  %s798_s5 = inlined_call_operand.vmem [shape: f32[20,16], index: 5, kind: output, shape index: {}]  }
   0x1   :  { %11 = vsyncpa [#allocation5], 0 }
   0x2   :  { %12 = vsyncpa [#allocation8], 0 }
   0x3   :  { %17 = vsyncadd [#allocation3], 128  ;;  %s716_s18 = smov [#allocation4]   ;;  %s717_s20 = smov [#allocation2]  }
   0x4   :  { %s30_s19 = sshll.u32 %s716_s18, 4  ;;  %s18_s21 = sshll.u32 %s717_s20, 4  ;;  %s31_s19 = int_to_ptr.vmem [resolvable:$true] %s30_s19  ;;  %s19_s21 = int_to_ptr.vmem [resolvable:$true] %s18_s21 }
   0x5   :  { %s638_s22 = scalar_lea.vmem %s31_s19, 512  ;;  %p643_p1 = scmp.lt.s32.totalorder %s31_s19, %s31_s19 }
   0x6   :  { %p639_p0 = scmp.ne.s32.totalorder %s31_s19, %s638_s22  ;;  %p644_p2 = scmp.lt.s32.totalorder %s638_s22, %s638_s22 }
   0x8   :  { %p645_p3 = por %p644_p2, %p643_p1 }
   0xa   :  { %p646_p4 = pnand %p645_p3, %p639_p0 }
   0xc   :  { %649 = shalt.err (!%p646_p4)
}
   0xd   :  { %s718_s23 = smov 128   ;;  %s719_s24 = smov 8  }
   0xe   :  { %36 = dma.hbm_to_vmem [thread:$0]  %s794_s1, 512, %s31_s19, [#allocation5], %s718_s23, %s718_s23, %s719_s24  }
   0xf   :  { %s658_s27 = scalar_lea.vmem %s19_s21, 384  ;;  %s662_s28 = scalar_lea.vmem %s19_s21, 512 }
  0x10   :  { %p659_p5 = scmp.ne.s32.totalorder %s19_s21, %s658_s27  ;;  %p663_p6 = scmp.lt.s32.totalorder %s19_s21, %s19_s21 }
  0x11   :  { %p664_p7 = scmp.lt.s32.totalorder %s662_s28, %s658_s27 }
  0x13   :  { %p665_p8 = por %p664_p7, %p663_p6 }
  0x15   :  { %p666_p9 = pnand %p665_p8, %p659_p5 }
  0x17   :  { %669 = shalt.err (!%p666_p9)
}
  0x18   :  { %24 = dma.hbm_to_vmem [thread:$0]  %s793_s0, 384, %s19_s21, [#allocation3], %s718_s23, %s718_s23, %s719_s24  }
  0x19   :  { %s720_s6 = smov [#allocation6]   ;;  %s721_s8 = smov [#allocation7]  }
  0x1a   :  { %s42_s7 = sshll.u32 %s720_s6, 4  ;;  %s54_s9 = sshll.u32 %s721_s8, 4  ;;  %s43_s7 = int_to_ptr.vmem [resolvable:$true] %s42_s7  ;;  %s55_s9 = int_to_ptr.vmem [resolvable:$true] %s54_s9 }
  0x1b   :  { %s678_s1 = scalar_lea.vmem %s43_s7, 2048  ;;  %p683_p11 = scmp.lt.s32.totalorder %s43_s7, %s43_s7 }
  0x1c   :  { %p679_p10 = scmp.ne.s32.totalorder %s43_s7, %s678_s1  ;;  %p684_p12 = scmp.lt.s32.totalorder %s678_s1, %s678_s1 }
  0x1e   :  { %p685_p13 = por %p684_p12, %p683_p11 }
  0x20   :  { %p686_p0 = pnand %p685_p13, %p679_p10 }
  0x22   :  { %689 = shalt.err (!%p686_p0)
}
  0x23   :  { %48 = dma.hbm_to_vmem [thread:$0]  %s795_s2, 2048, %s43_s7, [#allocation5], %s718_s23, %s718_s23, %s719_s24  }
  0x24   :  { %s698_s0 = scalar_lea.vmem %s55_s9, 2048  ;;  %p703_p2 = scmp.lt.s32.totalorder %s55_s9, %s55_s9 }
  0x25   :  { %p699_p1 = scmp.ne.s32.totalorder %s55_s9, %s698_s0  ;;  %p704_p3 = scmp.lt.s32.totalorder %s698_s0, %s698_s0 }
  0x27   :  { %p705_p4 = por %p704_p3, %p703_p2 }
  0x29   :  { %p706_p5 = pnand %p705_p4, %p699_p1 }
  0x2b   :  { %709 = shalt.err (!%p706_p5)
}
  0x2c   :  { %60 = dma.hbm_to_vmem [thread:$0]  %s796_s3, 2048, %s55_s9, [#allocation8], %s718_s23, %s718_s23, %s719_s24  }
  0x2d   :  { %710 = dma.done.wait [#allocation3], 512  }
  0x2e   :  { %711 = vsyncadd [#allocation3], 4294966784 }
  0x2f   :  { %712 = dma.done.wait [#allocation5], 2560  }
  0x30   :  { %713 = vsyncadd [#allocation5], 4294964736 }
  0x31   :  { %714 = dma.done.wait [#allocation8], 2048  }
  0x32   :  { %715 = vsyncadd [#allocation8], 4294965248  ;;  %vm88_vm0 = vcmask 261120   ;;  %v83_v0 = vld [vmem:[#allocation4 + $0x18] sm:$0xff]  ;;  %v82_v1 = vld [vmem:[#allocation4 + $0x10] sm:$0xff]  ;;  %v84_v36 = vlaneseq  ;;  %vm424_vm1 = vcmask 130048  }
  0x33   :  { %533 = vmatprep.subr.mxu0 %v83_v0  ;;  %v76_v2 = vld [vmem:[#allocation2] sm:$0xff]  ;;  %v81_v3 = vld [vmem:[#allocation4 + $0x8] sm:$0xff]  ;;  %v205_v4 = vld [vmem:[#allocation6 + $0x78] sm:$0xff] }
  0x34   :  { %534 = vmatpush3.msra.mxu0 %v83_v0  ;;  %541 = vmatprep.mubr.msk.f32.mxu0 %vm88_vm0, %v76_v2  ;;  %v204_v5 = vld [vmem:[#allocation6 + $0x70] sm:$0xff]  ;;  %v80_v6 = vld [vmem:[#allocation4] sm:$0xff]  ;;  %v203_v7 = vld [vmem:[#allocation6 + $0x68] sm:$0xff]  ;;  %v85_v37 = vshrl.u32 %v84_v36, 7 }
  0x35   :  { %535 = vmatprep.subr.mxu0 %v82_v1  ;;  %547 = vmatprep.subr.mxu1 %v205_v4  ;;  %v77_v8 = vld [vmem:[#allocation2 + $0x8] sm:$0xff]  ;;  %v202_v9 = vld [vmem:[#allocation6 + $0x60] sm:$0xff]  ;;  %v78_v10 = vld [vmem:[#allocation2 + $0x10] sm:$0xff] }
  0x36   :  { %536 = vmatpush3.msra.mxu0 %v82_v1  ;;  %548 = vmatpush3.msra.mxu1 %v205_v4  ;;  %v201_v11 = vld [vmem:[#allocation6 + $0x58] sm:$0xff]  ;;  %v200_v13 = vld [vmem:[#allocation6 + $0x50] sm:$0xff]  ;;  %v199_v14 = vld [vmem:[#allocation6 + $0x48] sm:$0xff]  ;;  %v86_v38 = vsub.s32 0, %v85_v37  ;;  %v208_v57 = vsub.s32 1, %v85_v37 }
  0x37   :  { %537 = vmatprep.subr.mxu0 %v81_v3  ;;  %549 = vmatprep.subr.mxu1 %v204_v5  ;;  %v79_v12 = vld [vmem:[#allocation2 + $0x18] sm:$0xff]  ;;  %v198_v15 = vld [vmem:[#allocation6 + $0x40] sm:$0xff]  ;;  %v196_v17 = vld [vmem:[#allocation6 + $0x30] sm:$0xff] }
  0x38   :  { %538 = vmatpush3.msra.mxu0 %v81_v3  ;;  %550 = vmatpush3.msra.mxu1 %v204_v5  ;;  %v197_v16 = vld [vmem:[#allocation6 + $0x38] sm:$0xff]  ;;  %v195_v18 = vld [vmem:[#allocation6 + $0x28] sm:$0xff]  ;;  %v194_v19 = vld [vmem:[#allocation6 + $0x20] sm:$0xff] }
  0x39   :  { %539 = vmatprep.subr.mxu0 %v80_v6  ;;  %551 = vmatprep.subr.mxu1 %v203_v7  ;;  %v193_v20 = vld [vmem:[#allocation6 + $0x18] sm:$0xff]  ;;  %v192_v21 = vld [vmem:[#allocation6 + $0x10] sm:$0xff]  ;;  %v191_v22 = vld [vmem:[#allocation6 + $0x8] sm:$0xff] }
  0x3a   :  { %540 = vmatpush3.msra.mxu0 %v80_v6  ;;  %552 = vmatpush3.msra.mxu1 %v203_v7  ;;  %v190_v23 = vld [vmem:[#allocation6] sm:$0xff]  ;;  %v314_v24 = vld [vmem:[#allocation7 + $0x78] sm:$0xff]  ;;  %v313_v25 = vld [vmem:[#allocation7 + $0x70] sm:$0xff]  ;;  %v317_v7 = vsub.s32 2, %v85_v37 }
  0x3b   :  { %542 = vmatmul.mubr.msk.f32.vlgmr.msra.gmra.mxu0 %vm88_vm0, %v77_v8  ;;  %553 = vmatprep.subr.mxu1 %v202_v9  ;;  %v312_v26 = vld [vmem:[#allocation7 + $0x68] sm:$0xff]  ;;  %v311_v27 = vld [vmem:[#allocation7 + $0x60] sm:$0xff]  ;;  %v310_v28 = vld [vmem:[#allocation7 + $0x58] sm:$0xff] }
  0x3c   :  { %544 = vmatprep.mubr.msk.f32.mxu0 %vm88_vm0, %v78_v10  ;;  %554 = vmatpush3.msra.mxu1 %v202_v9  ;;  %v309_v29 = vld [vmem:[#allocation7 + $0x50] sm:$0xff]  ;;  %v308_v30 = vld [vmem:[#allocation7 + $0x48] sm:$0xff]  ;;  %v307_v31 = vld [vmem:[#allocation7 + $0x40] sm:$0xff] }
  0x3d   :  { %555 = vmatprep.subr.mxu1 %v201_v11  ;;  %585 = vmatprep.subr.mxu0 %v314_v24  ;;  %v306_v32 = vld [vmem:[#allocation7 + $0x38] sm:$0xff]  ;;  %v305_v33 = vld [vmem:[#allocation7 + $0x30] sm:$0xff]  ;;  %v304_v34 = vld [vmem:[#allocation7 + $0x28] sm:$0xff] }
  0x3e   :  { %556 = vmatpush3.msra.mxu1 %v201_v11  ;;  %586 = vmatpush3.msra.mxu0 %v314_v24  ;;  %v303_v35 = vld [vmem:[#allocation7 + $0x20] sm:$0xff]  ;;  %v302_v53 = vld [vmem:[#allocation7 + $0x18] sm:$0xff]  ;;  %v301_v54 = vld [vmem:[#allocation7 + $0x10] sm:$0xff] }
  0x3f   :  { %545 = vmatmul.mubr.msk.f32.gmra.mxu0 %vm88_vm0, %v79_v12  ;;  %557 = vmatprep.subr.mxu1 %v200_v13  ;;  %v75_v39 = vld [vmem:[%s797_s4] sm:$0x7]  ;;  %v300_v55 = vld [vmem:[#allocation7 + $0x8] sm:$0xff]  ;;  %s722_s4 = smov 112  }
  0x40   :  { %558 = vmatpush3.msra.mxu1 %v200_v13  ;;  %587 = vmatprep.subr.mxu0 %v313_v25  ;;  %v87_v40 = vrot.slane %v75_v39, %v86_v38  ;;  %v299_v56 = vld [vmem:[#allocation7] sm:$0xff]  ;;  %v209_v58 = vrot.slane %v75_v39, %v208_v57  ;;  %v318_v9 = vrot.slane %v75_v39, %v317_v7 }
  0x41   :  { %559 = vmatprep.subr.mxu1 %v199_v14  ;;  %588 = vmatpush3.msra.mxu0 %v313_v25 }
  0x42   :  { %560 = vmatpush3.msra.mxu1 %v199_v14  ;;  %589 = vmatprep.subr.mxu0 %v312_v26 }
  0x43   :  { %561 = vmatprep.subr.mxu1 %v198_v15  ;;  %590 = vmatpush3.msra.mxu0 %v312_v26 }
  0x44   :  { %562 = vmatpush3.msra.mxu1 %v198_v15  ;;  %591 = vmatprep.subr.mxu0 %v311_v27 }
  0x45   :  { %563 = vmatprep.subr.mxu1 %v197_v16  ;;  %592 = vmatpush3.msra.mxu0 %v311_v27 }
  0x46   :  { %564 = vmatpush3.msra.mxu1 %v197_v16  ;;  %593 = vmatprep.subr.mxu0 %v310_v28 }
  0x47   :  { %565 = vmatprep.subr.mxu1 %v196_v17  ;;  %594 = vmatpush3.msra.mxu0 %v310_v28 }
  0x48   :  { %566 = vmatpush3.msra.mxu1 %v196_v17  ;;  %595 = vmatprep.subr.mxu0 %v309_v29 }
  0x49   :  { %567 = vmatprep.subr.mxu1 %v195_v18  ;;  %596 = vmatpush3.msra.mxu0 %v309_v29 }
  0x4a   :  { %568 = vmatpush3.msra.mxu1 %v195_v18  ;;  %597 = vmatprep.subr.mxu0 %v308_v30 }
  0x4b   :  { %569 = vmatprep.subr.mxu1 %v194_v19  ;;  %598 = vmatpush3.msra.mxu0 %v308_v30 }
  0x4c   :  { %570 = vmatpush3.msra.mxu1 %v194_v19  ;;  %599 = vmatprep.subr.mxu0 %v307_v31 }
  0x4d   :  { %571 = vmatprep.subr.mxu1 %v193_v20  ;;  %600 = vmatpush3.msra.mxu0 %v307_v31 }
  0x4e   :  { %572 = vmatpush3.msra.mxu1 %v193_v20  ;;  %601 = vmatprep.subr.mxu0 %v306_v32 }
  0x4f   :  { %573 = vmatprep.subr.mxu1 %v192_v21  ;;  %602 = vmatpush3.msra.mxu0 %v306_v32 }
  0x50   :  { %574 = vmatpush3.msra.mxu1 %v192_v21  ;;  %603 = vmatprep.subr.mxu0 %v305_v33 }
  0x51   :  { %575 = vmatprep.subr.mxu1 %v191_v22  ;;  %604 = vmatpush3.msra.mxu0 %v305_v33 }
  0x52   :  { %576 = vmatpush3.msra.mxu1 %v191_v22  ;;  %605 = vmatprep.subr.mxu0 %v304_v34 }
  0x53   :  { %577 = vmatprep.subr.mxu1 %v190_v23  ;;  %606 = vmatpush3.msra.mxu0 %v304_v34 }
  0x54   :  { %578 = vmatpush3.msra.mxu1 %v190_v23  ;;  %607 = vmatprep.subr.mxu0 %v303_v35 }
  0x55   :  { %608 = vmatpush3.msra.mxu0 %v303_v35 }
  0x56   :  { %609 = vmatprep.subr.mxu0 %v302_v53 }
  0x57   :  { %610 = vmatpush3.msra.mxu0 %v302_v53 }
  0x58   :  { %611 = vmatprep.subr.mxu0 %v301_v54 }
  0x59   :  { %612 = vmatpush3.msra.mxu0 %v301_v54 }
  0x5a   :  { %613 = vmatprep.subr.mxu0 %v300_v55 }
  0x5b   :  { %614 = vmatpush3.msra.mxu0 %v300_v55 }
  0x5c   :  { %615 = vmatprep.subr.mxu0 %v299_v56 }
  0x5d   :  { %616 = vmatpush3.msra.mxu0 %v299_v56 }
  0xfb   :  { %v543_v41 = vpop.f32.mrf.mxu0 }
  0xfc   :  { %v173_v42 = vadd.f32 %v543_v41, %v87_v40 }
  0xfd   :  { %v167_v43 = vpop.f32.mrf.mxu0 }
  0xfe   :  { %v168_v44 = vadd.f32 %v167_v43, %v87_v40  ;;  %v187_v47 = vmax.f32 %v173_v42, 0.0 }
  0xff   :  { %v546_v45 = vpop.f32.mrf.mxu0 }
 0x100   :  { %v186_v46 = vmax.f32 %v168_v44, 0.0  ;;  %v183_v48 = vadd.f32 %v546_v45, %v87_v40 }
 0x101   :  { %v177_v49 = vpop.f32.mrf.mxu0 }
 0x102   :  { %v178_v50 = vadd.f32 %v177_v49, %v87_v40  ;;  %579 = vmatprep.mubr.f32.mxu1 %v186_v46  ;;  %v189_v52 = vmax.f32 %v183_v48, 0.0 }
 0x103   :  { %580 = vmatmul.mubr.f32.vlgmr.msra.gmra.mxu1 %v187_v47 }
 0x104   :  { %v188_v51 = vmax.f32 %v178_v50, 0.0 }
 0x106   :  { %582 = vmatprep.mubr.f32.mxu1 %v188_v51 }
 0x107   :  { %583 = vmatmul.mubr.f32.gmra.mxu1 %v189_v52 }
 0x1c3   :  { %v581_v59 = vpop.f32.mrf.mxu1 }
 0x1c4   :  { %v282_v60 = vadd.f32 %v581_v59, %v209_v58 }
 0x1c5   :  { %v276_v61 = vpop.f32.mrf.mxu1 }
 0x1c6   :  { %v277_v62 = vadd.f32 %v276_v61, %v209_v58  ;;  %v296_v1 = vmax.f32 %v282_v60, 0.0 }
 0x1c7   :  { %v584_v63 = vpop.f32.mrf.mxu1 }
 0x1c8   :  { %v295_v0 = vmax.f32 %v277_v62, 0.0  ;;  %v292_v2 = vadd.f32 %v584_v63, %v209_v58 }
 0x1c9   :  { %v286_v3 = vpop.f32.mrf.mxu1 }
 0x1ca   :  { %v287_v4 = vadd.f32 %v286_v3, %v209_v58  ;;  %617 = vmatprep.mubr.f32.mxu0 %v295_v0  ;;  %v298_v6 = vmax.f32 %v292_v2, 0.0 }
 0x1cb   :  { %618 = vmatmul.mubr.f32.vlgmr.msra.gmra.mxu0 %v296_v1 }
 0x1cc   :  { %v297_v5 = vmax.f32 %v287_v4, 0.0 }
 0x1ce   :  { %620 = vmatprep.mubr.f32.mxu0 %v297_v5 }
 0x1cf   :  { %621 = vmatmul.mubr.f32.gmra.mxu0 %v298_v6 }
 0x28b   :  { %v619_v8 = vpop.f32.mrf.mxu0 }
 0x28c   :  { %v391_v14 = vadd.f32 %v619_v8, %v318_v9 }
 0x28d   :  { %v385_v10 = vpop.f32.mrf.mxu0 }
 0x28e   :  { %v386_v11 = vadd.f32 %v385_v10, %v318_v9 }
 0x28f   :  { %v622_v12 = vpop.f32.mrf.mxu0 }
 0x290   :  { %408 = vrot.lane.b32.xlu0 %v386_v11, %s722_s4  ;;  %v401_v16 = vadd.f32 %v622_v12, %v318_v9 }
 0x291   :  { %v395_v13 = vpop.f32.mrf.mxu0 }
 0x292   :  { %v396_v15 = vadd.f32 %v395_v13, %v318_v9 }
 0x294   :  { %412 = vrot.lane.b32.xlu1 %v396_v15, %s722_s4  ;;  %410 = vrot.lane.b32.xlu0 %v391_v14, %s722_s4 }
 0x298   :  { %414 = vrot.lane.b32.xlu1 %v401_v16, %s722_s4 }
 0x302   :  { %v409_v17 = vpop.permute.xlu0 %408 }
 0x303   :  { %v420_v18 = vmin.f32 %v386_v11, %v409_v17 }
 0x305   :  { %425 = vst.msk [vmem:[#allocation9] sm:$0xff] %vm424_vm1, %v420_v18 }
 0x306   :  { %v413_v19 = vpop.permute.xlu1 %412  ;;  %v411_v20 = vpop.permute.xlu0 %410 }
 0x307   :  { %v422_v21 = vmin.f32 %v396_v15, %v413_v19  ;;  %v421_v22 = vmin.f32 %v391_v14, %v411_v20 }
 0x309   :  { %427 = vst.msk [vmem:[#allocation9 + $0x10] sm:$0xff] %vm424_vm1, %v422_v21  ;;  %426 = vst.msk [vmem:[#allocation9 + $0x8] sm:$0xff] %vm424_vm1, %v421_v22 }
 0x30a   :  { %v415_v23 = vpop.permute.xlu1 %414 }
 0x30c   :  { %v463_v24 = vld [vmem:[#allocation9] sm:$0xff] }
 0x30d   :  { %464 = vst [vmem:[%s798_s5] sm:$0xff] %v463_v24 }
 0x310   :  { %v467_v25 = vld [vmem:[#allocation9 + $0x10] sm:$0xff]  ;;  %v465_v26 = vld [vmem:[#allocation9 + $0x8] sm:$0xff] }
 0x311   :  { %468 = vst [vmem:[%s798_s5 + $0x10] sm:$0xff] %v467_v25  ;;  %466 = vst [vmem:[%s798_s5 + $0x8] sm:$0xff] %v465_v26 }
 0x312   :  { %474 = vsyncpa [#allocation3], 1 }
 0x313   :  { %475 = vsyncpa [#allocation5], 1 }
 0x314   :  { %476 = vsyncpa [#allocation8], 1 }

</bundles_post_ra>
